<compile_context>
chip_gen: v6e
topology: v6e:2x2x1
jax: 0.10.0
libtpu: 0.0.40
codegen_flags: <defaults>
</compile_context>

<pallas_src>
import jax
import jax.numpy as jnp
from jax.experimental import pallas as pl
from jax.experimental.pallas import tpu as pltpu


# ----------------------------------------------------------------------------
# Hardware queries (best-effort; safe defaults if the query is unavailable).
# ----------------------------------------------------------------------------
def _tpu_vmem_capacity_bytes():
    try:
        info = pltpu.get_tpu_info()
        cap = getattr(info, "vmem_capacity_bytes", None)
        if isinstance(cap, int) and cap > 0:
            return cap
    except Exception:
        pass
    return 64 * 1024 * 1024  # conservative default (v7x physical VMEM)


def _num_tensorcores():
    try:
        info = pltpu.get_tpu_info()
        for name in ("num_cores", "core_count", "num_tensorcores", "tensorcores_per_chip"):
            v = getattr(info, name, None)
            if isinstance(v, int) and v > 0:
                return int(v)
    except Exception:
        pass
    return 1


def _batch_axis_semantics(num_steps):
    """CORE_PARALLEL on multi-TC chips (v7x) when steps split evenly, else 'parallel'."""
    n_cores = _num_tensorcores()
    core_parallel = getattr(pltpu, "CORE_PARALLEL", None)
    if n_cores > 1 and core_parallel is not None and num_steps % n_cores == 0:
        return core_parallel
    return "parallel"


# ----------------------------------------------------------------------------
# Single-pass kernel: pool + fc + scale on one resident (bt, C, HW) tile.
# ----------------------------------------------------------------------------
def _channel_attention_kernel(x_ref, w1a_ref, w1b_ref, b1_ref, w2_ref, b2_ref, o_ref):
    x = x_ref[...]                                               # native dtype, no f32 tile copy
    hw = x.shape[-1]

    # Global pooling over the lane-dense spatial dim (f32 sum, exact native max).
    # TODO(synk): if bf16 inputs ever show a materialized f32 tile temp in
    # pl.lower_as_mlir, switch to a chunked f32 partial-sum loop; the wrapper's
    # budget math already reserves room for that temp.
    avg = jnp.sum(x.astype(jnp.float32), axis=-1) * (1.0 / hw)   # (bt, C)
    mx = jnp.max(x, axis=-1).astype(jnp.float32)                 # (bt, C)

    # fc: Linear -> ReLU -> Linear -> sigmoid.  Split first-layer weight avoids
    # a cross-lane concat; both matmuls accumulate into the same f32 result.
    h = (jnp.dot(avg, w1a_ref[...], preferred_element_type=jnp.float32)
         + jnp.dot(mx, w1b_ref[...], preferred_element_type=jnp.float32)
         + b1_ref[...])
    h = jnp.maximum(h, 0.0)
    logits = jnp.dot(h, w2_ref[...], preferred_element_type=jnp.float32) + b2_ref[...]
    att = jax.nn.sigmoid(logits).astype(x.dtype)                 # (bt, C)

    # Broadcast-multiply in native dtype (keeps v5e's thin VALU/vst slack).
    o_ref[...] = (x * att[:, :, None]).astype(o_ref.dtype)


def _single_pass(x3, w1a, w1b, b1, w2, b2, bt, vmem_limit_bytes):
    B, C, HW = x3.shape
    hidden = w1a.shape[1]
    itemsize = jnp.dtype(x3.dtype).itemsize
    steps = pl.cdiv(B, bt)

    cost = pl.CostEstimate(
        flops=2 * B * (2 * C * hidden + hidden * C) + 3 * B * C * HW,
        transcendentals=B * C,
        bytes_accessed=2 * B * C * HW * itemsize + (3 * C * hidden + C + hidden) * 4,
    )

    return pl.pallas_call(
        _channel_attention_kernel,
        out_shape=jax.ShapeDtypeStruct((B, C, HW), x3.dtype),
        grid_spec=pltpu.PrefetchScalarGridSpec(
            num_scalar_prefetch=0,
            grid=(steps,),
            in_specs=[
                pl.BlockSpec((bt, C, HW), lambda b: (b, 0, 0)),   # x tile (bt samples)
                pl.BlockSpec((C, hidden), lambda b: (0, 0)),      # w1 rows for avg half
                pl.BlockSpec((C, hidden), lambda b: (0, 0)),      # w1 rows for max half
                pl.BlockSpec((1, hidden), lambda b: (0, 0)),      # b1
                pl.BlockSpec((hidden, C), lambda b: (0, 0)),      # w2
                pl.BlockSpec((1, C), lambda b: (0, 0)),           # b2
            ],
            out_specs=pl.BlockSpec((bt, C, HW), lambda b: (b, 0, 0)),
        ),
        compiler_params=pltpu.CompilerParams(
            dimension_semantics=(_batch_axis_semantics(steps),),
            vmem_limit_bytes=vmem_limit_bytes,
        ),
        cost_estimate=cost,
    )(x3, w1a, w1b, b1, w2, b2)


# ----------------------------------------------------------------------------
# Two-pass fallback: pass 1 = HW-tiled pool + fc -> att; pass 2 = scale.
# ----------------------------------------------------------------------------
def _make_pool_fc_kernel(hw_total, hw_tile):
    ragged = (hw_total % hw_tile) != 0

    def kernel(x_ref, w1a_ref, w1b_ref, b1_ref, w2_ref, b2_ref, att_ref, sum_sc, max_sc):
        h = pl.program_id(1)

        @pl.when(h == 0)
        def _():
            sum_sc[...] = jnp.zeros_like(sum_sc)
            max_sc[...] = jnp.full_like(max_sc, -jnp.inf)

        xs = x_ref[...].astype(jnp.float32)                       # (1, C, hw_tile)
        if ragged:
            pos = h * hw_tile + jax.lax.broadcasted_iota(jnp.int32, xs.shape, 2)
            valid = pos < hw_total
            xs_sum = jnp.where(valid, xs, 0.0)
            xs_max = jnp.where(valid, xs, -jnp.inf)
        else:
            xs_sum = xs
            xs_max = xs
        sum_sc[...] += jnp.sum(xs_sum, axis=-1)                   # (1, C)
        max_sc[...] = jnp.maximum(max_sc[...], jnp.max(xs_max, axis=-1))

        @pl.when(h == pl.num_programs(1) - 1)
        def _():
            avg = sum_sc[...] * (1.0 / hw_total)
            mx = max_sc[...]
            hid = (jnp.dot(avg, w1a_ref[...], preferred_element_type=jnp.float32)
                   + jnp.dot(mx, w1b_ref[...], preferred_element_type=jnp.float32)
                   + b1_ref[...])
            hid = jnp.maximum(hid, 0.0)
            logits = jnp.dot(hid, w2_ref[...], preferred_element_type=jnp.float32) + b2_ref[...]
            att_ref[0] = jax.nn.sigmoid(logits).astype(att_ref.dtype)   # (1, C)

    return kernel


def _pool_fc_pass(x3, w1a, w1b, b1, w2, b2, hw_tile, vmem_limit_bytes):
    B, C, HW = x3.shape
    hidden = w1a.shape[1]
    hsteps = pl.cdiv(HW, hw_tile)
    kernel = _make_pool_fc_kernel(HW, hw_tile)
    return pl.pallas_call(
        kernel,
        out_shape=jax.ShapeDtypeStruct((B, 1, C), jnp.float32),
        grid_spec=pltpu.PrefetchScalarGridSpec(
            num_scalar_prefetch=0,
            grid=(B, hsteps),
            in_specs=[
                pl.BlockSpec((1, C, hw_tile), lambda b, h: (b, 0, h)),
                pl.BlockSpec((C, hidden), lambda b, h: (0, 0)),
                pl.BlockSpec((C, hidden), lambda b, h: (0, 0)),
                pl.BlockSpec((1, hidden), lambda b, h: (0, 0)),
                pl.BlockSpec((hidden, C), lambda b, h: (0, 0)),
                pl.BlockSpec((1, C), lambda b, h: (0, 0)),
            ],
            out_specs=pl.BlockSpec((1, 1, C), lambda b, h: (b, 0, 0)),
            scratch_shapes=[pltpu.VMEM((1, C), jnp.float32),      # sum accumulator
                            pltpu.VMEM((1, C), jnp.float32)],     # max accumulator
        ),
        compiler_params=pltpu.CompilerParams(
            dimension_semantics=(_batch_axis_semantics(B), "arbitrary"),
            vmem_limit_bytes=vmem_limit_bytes,
        ),
    )(x3, w1a, w1b, b1, w2, b2)


def _scale_kernel(x_ref, att_ref, o_ref):
    att = att_ref[0].astype(x_ref.dtype)                          # (1, C)
    o_ref[...] = (x_ref[...] * att[:, :, None]).astype(o_ref.dtype)


def _scale_pass(x3, att, hw_tile, vmem_limit_bytes):
    B, C, HW = x3.shape
    hsteps = pl.cdiv(HW, hw_tile)
    return pl.pallas_call(
        _scale_kernel,
        out_shape=jax.ShapeDtypeStruct((B, C, HW), x3.dtype),
        grid_spec=pltpu.PrefetchScalarGridSpec(
            num_scalar_prefetch=0,
            grid=(B, hsteps),
            in_specs=[
                pl.BlockSpec((1, C, hw_tile), lambda b, h: (b, 0, h)),
                pl.BlockSpec((1, 1, C), lambda b, h: (b, 0, 0)),
            ],
            out_specs=pl.BlockSpec((1, C, hw_tile), lambda b, h: (b, 0, h)),
        ),
        compiler_params=pltpu.CompilerParams(
            dimension_semantics=(_batch_axis_semantics(B), "parallel"),
            vmem_limit_bytes=vmem_limit_bytes,
        ),
    )(x3, att)


# ----------------------------------------------------------------------------
# Tiling heuristics and top-level wrapper.
# ----------------------------------------------------------------------------
def _choose_hw_tile(HW, C, itemsize, budget_bytes, n_buffers):
    per_hw_elem = n_buffers * C * itemsize
    if itemsize < 4:
        per_hw_elem += C * 4          # headroom for a possible f32 reduce temp (bf16)
    tile = budget_bytes // max(per_hw_elem, 1)
    tile = (tile // 128) * 128        # lane-dense, 128-multiple tiles
    tile = max(tile, 128)
    return min(tile, HW)


def channel_attention(x, w1, b1, w2, b2, *,
                      data_block_budget_bytes=None, vmem_limit_bytes=None):
    """Channel attention forward.

    x : (B, C, H, W) NCHW.
    w1: (2C, hidden), b1: (hidden,)  -- first Linear, stored (in, out).
    w2: (hidden, C),  b2: (C,)       -- second Linear, stored (in, out).
    """
    B, C, H, W = x.shape
    HW = H * W
    hidden = w1.shape[1]
    assert w1.shape[0] == 2 * C, "w1 must have shape (2*C, hidden)"
    assert hidden >= 1, "in_channels must be >= ratio so the fc hidden dim is non-zero"
    itemsize = jnp.dtype(x.dtype).itemsize

    # Generation-aware VMEM budgets (v5e/v6e: 128 MiB physical; v7x: 64 MiB).
    vmem_cap = _tpu_vmem_capacity_bytes()
    if data_block_budget_bytes is None:
        data_block_budget_bytes = min(max((vmem_cap * 3) // 8, 16 * 1024 * 1024),
                                      64 * 1024 * 1024)
    if vmem_limit_bytes is None:
        vmem_limit_bytes = min(max((vmem_cap * 3) // 4, 32 * 1024 * 1024),
                               110 * 1024 * 1024)

    # Split the first-layer weight so the kernels never concatenate along lanes.
    w1_avg = w1[:C]
    w1_max = w1[C:]
    b1_2d = b1.reshape(1, hidden)
    b2_2d = b2.reshape(1, C)
    x3 = x.reshape(B, C, HW)
    # TODO(synk): for HW % 128 != 0 with C % 128 == 0, an NHWC-style (B, HW, C)
    # layout would keep stores unmasked; not done here since it needs a transpose.

    sample_bytes = C * HW * itemsize
    # Double-buffered input + output block, plus a possible f32 reduce temp for
    # sub-32-bit inputs.
    per_sample_cost = 4 * sample_bytes + (C * HW * 4 if itemsize < 4 else 0)

    if per_sample_cost <= data_block_budget_bytes:
        # ---- single-pass path ----
        bt = max(1, min(B, data_block_budget_bytes // per_sample_cost))
        # Target >= ~8 grid steps for DMA/compute overlap, while keeping each
        # input tile >= ~2 MiB (per-step overhead is ~0.35 us).
        min_tile_bytes = 2 * 1024 * 1024
        while bt > 1 and pl.cdiv(B, bt) < 8:
            new_bt = bt // 2
            if new_bt * sample_bytes < min_tile_bytes:
                break
            bt = new_bt
        out3 = _single_pass(x3, w1_avg, w1_max, b1_2d, w2, b2_2d, bt, vmem_limit_bytes)
    else:
        # ---- two-pass fallback: a single sample exceeds the data budget ----
        hw_tile1 = _choose_hw_tile(HW, C, itemsize, data_block_budget_bytes, n_buffers=2)
        hw_tile2 = _choose_hw_tile(HW, C, itemsize, data_block_budget_bytes, n_buffers=4)
        att = _pool_fc_pass(x3, w1_avg, w1_max, b1_2d, w2, b2_2d, hw_tile1, vmem_limit_bytes)
        out3 = _scale_pass(x3, att, hw_tile2, vmem_limit_bytes)

    return out3.reshape(B, C, H, W)


if __name__ == "__main__":
    key = jax.random.PRNGKey(0)
    B, C, H, W = 2, 32, 16, 16
    ratio = 16
    hidden = max(C // ratio, 1)   # 2

    k1, k2, k3, k4, k5, k6 = jax.random.split(key, 6)
    x = jax.random.normal(k1, (B, C, H, W), jnp.float32)

    # Deterministic init; weights stored (in, out) for the kernel's row-vector matmuls.
    bound1 = 1.0 / (2 * C) ** 0.5
    w1 = jax.random.uniform(k2, (2 * C, hidden), jnp.float32, -bound1, bound1)
    b1 = jax.random.uniform(k3, (hidden,), jnp.float32, -bound1, bound1)
    bound2 = 1.0 / hidden ** 0.5
    w2 = jax.random.uniform(k4, (hidden, C), jnp.float32, -bound2, bound2)
    b2 = jax.random.uniform(k5, (C,), jnp.float32, -bound2, bound2)

    def reference(xv):
        avg = jnp.mean(xv, axis=(2, 3))
        mx = jnp.max(xv, axis=(2, 3))
        pooled = jnp.concatenate([avg, mx], axis=1)
        hh = jnp.maximum(pooled @ w1 + b1, 0.0)
        att = jax.nn.sigmoid(hh @ w2 + b2)
        return xv * att[:, :, None, None]

    # Main (single-pass) path.
    out = jax.block_until_ready(channel_attention(x, w1, b1, w2, b2))
    assert out.shape == (B, C, H, W)
    assert jnp.allclose(out, reference(x), atol=1e-5, rtol=1e-5), "single-pass mismatch"

    # Also exercise the two-pass (HW-tiled) fallback and ragged HW tiles by
    # forcing a tiny data budget on a non-128-multiple spatial size.
    x2 = jax.random.normal(k6, (B, C, 30, 30), jnp.float32)
    out2 = jax.block_until_ready(
        channel_attention(x2, w1, b1, w2, b2, data_block_budget_bytes=128 * 1024))
    assert jnp.allclose(out2, reference(x2), atol=1e-5, rtol=1e-5), "two-pass mismatch"

    print("KERNEL_OK")
</pallas_src>

<mosaic_0001>
module attributes {stable_mosaic.version = 11 : i64} {
  func.func @_channel_attention_kernel(%arg0: i32, %arg1: memref<2x32x256xf32, #tpu.memory_space<vmem>>, %arg2: memref<32x2xf32, #tpu.memory_space<vmem>>, %arg3: memref<32x2xf32, #tpu.memory_space<vmem>>, %arg4: memref<1x2xf32, #tpu.memory_space<vmem>>, %arg5: memref<2x32xf32, #tpu.memory_space<vmem>>, %arg6: memref<1x32xf32, #tpu.memory_space<vmem>>, %arg7: memref<2x32x256xf32, #tpu.memory_space<vmem>>) attributes {dimension_semantics = [#tpu.dimension_semantics<parallel>], iteration_bounds = array<i64: 1>, scalar_prefetch = 0 : i64, scratch_operands = 0 : i64, tpu.core_type = #tpu.core_type<tc>, window_params = [{transform_indices = @transform_0, window_bounds = array<i64: 2, 32, 256>}, {pipeline_mode = #tpu.pipeline_mode<synchronous>, transform_indices = @transform_1, window_bounds = array<i64: 32, 2>}, {pipeline_mode = #tpu.pipeline_mode<synchronous>, transform_indices = @transform_2, window_bounds = array<i64: 32, 2>}, {pipeline_mode = #tpu.pipeline_mode<synchronous>, transform_indices = @transform_3, window_bounds = array<i64: 1, 2>}, {pipeline_mode = #tpu.pipeline_mode<synchronous>, transform_indices = @transform_4, window_bounds = array<i64: 2, 32>}, {pipeline_mode = #tpu.pipeline_mode<synchronous>, transform_indices = @transform_5, window_bounds = array<i64: 1, 32>}, {transform_indices = @transform_6, window_bounds = array<i64: 2, 32, 256>}]} {
    %c0 = arith.constant 0 : index
    %c0_0 = arith.constant 0 : index
    %c0_1 = arith.constant 0 : index
    %0 = vector.load %arg1[%c0, %c0_0, %c0_1] : memref<2x32x256xf32, #tpu.memory_space<vmem>>, vector<2x32x256xf32>
    %cst = arith.constant dense<0.000000e+00> : vector<2x32xf32>
    %1 = vector.multi_reduction <add>, %0, %cst [2] : vector<2x32x256xf32> to vector<2x32xf32>
    %cst_2 = arith.constant 3.906250e-03 : f32
    %2 = vector.broadcast %cst_2 : f32 to vector<2x32xf32>
    %3 = arith.mulf %1, %2 : vector<2x32xf32>
    %cst_3 = arith.constant dense<0xFF800000> : vector<2x32xf32>
    %4 = vector.multi_reduction <maximumf>, %0, %cst_3 [2] : vector<2x32x256xf32> to vector<2x32xf32>
    %c0_4 = arith.constant 0 : index
    %c0_5 = arith.constant 0 : index
    %5 = vector.load %arg2[%c0_4, %c0_5] : memref<32x2xf32, #tpu.memory_space<vmem>>, vector<32x2xf32>
    %cst_6 = arith.constant dense<0.000000e+00> : vector<2x2xf32>
    %6 = tpu.matmul %3, %5, %cst_6 {dimension_numbers = #tpu.dot_dimension_numbers<[1], [0], [0], [1], [0, 0, 1, 1], [], []>} : vector<2x32xf32>, vector<32x2xf32>, vector<2x2xf32> -> vector<2x2xf32>
    %c0_7 = arith.constant 0 : index
    %c0_8 = arith.constant 0 : index
    %7 = vector.load %arg3[%c0_7, %c0_8] : memref<32x2xf32, #tpu.memory_space<vmem>>, vector<32x2xf32>
    %cst_9 = arith.constant dense<0.000000e+00> : vector<2x2xf32>
    %8 = tpu.matmul %4, %7, %cst_9 {dimension_numbers = #tpu.dot_dimension_numbers<[1], [0], [0], [1], [0, 0, 1, 1], [], []>} : vector<2x32xf32>, vector<32x2xf32>, vector<2x2xf32> -> vector<2x2xf32>
    %9 = arith.addf %6, %8 : vector<2x2xf32>
    %c0_10 = arith.constant 0 : index
    %c0_11 = arith.constant 0 : index
    %10 = vector.load %arg4[%c0_10, %c0_11] : memref<1x2xf32, #tpu.memory_space<vmem>>, vector<1x2xf32>
    %11 = vector.broadcast %10 : vector<1x2xf32> to vector<2x2xf32>
    %12 = arith.addf %9, %11 : vector<2x2xf32>
    %cst_12 = arith.constant 0.000000e+00 : f32
    %13 = vector.broadcast %cst_12 : f32 to vector<2x2xf32>
    %14 = arith.maximumf %12, %13 : vector<2x2xf32>
    %c0_13 = arith.constant 0 : index
    %c0_14 = arith.constant 0 : index
    %15 = vector.load %arg5[%c0_13, %c0_14] : memref<2x32xf32, #tpu.memory_space<vmem>>, vector<2x32xf32>
    %cst_15 = arith.constant dense<0.000000e+00> : vector<2x32xf32>
    %16 = tpu.matmul %14, %15, %cst_15 {dimension_numbers = #tpu.dot_dimension_numbers<[1], [0], [0], [1], [0, 0, 1, 1], [], []>} : vector<2x2xf32>, vector<2x32xf32>, vector<2x32xf32> -> vector<2x32xf32>
    %c0_16 = arith.constant 0 : index
    %c0_17 = arith.constant 0 : index
    %17 = vector.load %arg6[%c0_16, %c0_17] : memref<1x32xf32, #tpu.memory_space<vmem>>, vector<1x32xf32>
    %18 = vector.broadcast %17 : vector<1x32xf32> to vector<2x32xf32>
    %19 = arith.addf %16, %18 : vector<2x32xf32>
    %20 = arith.negf %19 : vector<2x32xf32>
    %21 = math.exp %20 : vector<2x32xf32>
    %cst_18 = arith.constant 1.000000e+00 : f32
    %22 = vector.broadcast %cst_18 : f32 to vector<2x32xf32>
    %23 = arith.addf %22, %21 : vector<2x32xf32>
    %24 = arith.divf %22, %23 : vector<2x32xf32>
    %25 = vector.shape_cast %24 : vector<2x32xf32> to vector<2x32x1xf32>
    %26 = vector.broadcast %25 : vector<2x32x1xf32> to vector<2x32x256xf32>
    %27 = arith.mulf %0, %26 : vector<2x32x256xf32>
    %c0_19 = arith.constant 0 : index
    %c0_20 = arith.constant 0 : index
    %c0_21 = arith.constant 0 : index
    %28 = vector.load %arg7[%c0_19, %c0_20, %c0_21] : memref<2x32x256xf32, #tpu.memory_space<vmem>>, vector<2x32x256xf32>
    tpu.vector_store %arg7[%c0_19, %c0_20, %c0_21], %27 {strides = array<i32>} : memref<2x32x256xf32, #tpu.memory_space<vmem>>, vector<2x32x256xf32>,
    return
  }
  func.func @transform_0(%arg0: i32) -> (i32, i32, i32) {
    %c0_i32 = arith.constant 0 : i32
    %c0_i32_0 = arith.constant 0 : i32
    %c0_i32_1 = arith.constant 0 : i32
    return %arg0, %c0_i32, %c0_i32_0 : i32, i32, i32
  }
  func.func @transform_1(%arg0: i32) -> (i32, i32) {
    %c0_i32 = arith.constant 0 : i32
    %c0_i32_0 = arith.constant 0 : i32
    %c0_i32_1 = arith.constant 0 : i32
    return %c0_i32, %c0_i32_0 : i32, i32
  }
  func.func @transform_2(%arg0: i32) -> (i32, i32) {
    %c0_i32 = arith.constant 0 : i32
    %c0_i32_0 = arith.constant 0 : i32
    %c0_i32_1 = arith.constant 0 : i32
    return %c0_i32, %c0_i32_0 : i32, i32
  }
  func.func @transform_3(%arg0: i32) -> (i32, i32) {
    %c0_i32 = arith.constant 0 : i32
    %c0_i32_0 = arith.constant 0 : i32
    %c0_i32_1 = arith.constant 0 : i32
    return %c0_i32, %c0_i32_0 : i32, i32
  }
  func.func @transform_4(%arg0: i32) -> (i32, i32) {
    %c0_i32 = arith.constant 0 : i32
    %c0_i32_0 = arith.constant 0 : i32
    %c0_i32_1 = arith.constant 0 : i32
    return %c0_i32, %c0_i32_0 : i32, i32
  }
  func.func @transform_5(%arg0: i32) -> (i32, i32) {
    %c0_i32 = arith.constant 0 : i32
    %c0_i32_0 = arith.constant 0 : i32
    %c0_i32_1 = arith.constant 0 : i32
    return %c0_i32, %c0_i32_0 : i32, i32
  }
  func.func @transform_6(%arg0: i32) -> (i32, i32, i32) {
    %c0_i32 = arith.constant 0 : i32
    %c0_i32_0 = arith.constant 0 : i32
    %c0_i32_1 = arith.constant 0 : i32
    return %arg0, %c0_i32, %c0_i32_0 : i32, i32, i32
  }
}

</mosaic_0001>

<bundles_post_ra>
// kernel: tpu_custom_call.1
= control target key start
LH: loop header
LB: loop body
LE: loop exit
PB: predicated region body
PF: predicated region fallthrough
CT: control target
= control target key end

     0   :  { %11 = vsyncpa [#allocation3], 0  ;;  %s859_s0 = inlined_call_operand.hbm [shape: f32[2,32,256], index: 0, kind: input, shape index: {}]   ;;  %s860_s1 = inlined_call_operand.vmem [shape: f32[32,2], index: 1, kind: input, shape index: {}]   ;;  %s861_s2 = inlined_call_operand.vmem [shape: f32[32,2], index: 2, kind: input, shape index: {}]   ;;  %s862_s3 = inlined_call_operand.vmem [shape: f32[1,2], index: 3, kind: input, shape index: {}]   ;;  %s863_s4 = inlined_call_operand.vmem [shape: f32[2,32], index: 4, kind: input, shape index: {}]   ;;  %s864_s5 = inlined_call_operand.vmem [shape: f32[1,32], index: 5, kind: input, shape index: {}]   ;;  %s865_s6 = inlined_call_operand.hbm [shape: f32[2,32,256], index: 6, kind: output, shape index: {}]  }
   0x1   :  { %12 = vsyncpa [#allocation4], 0  ;;  %s654_s21 = smov [#allocation2]  }
   0x2   :  { %s18_s22 = sshll.u32 %s654_s21, 4  ;;  %s19_s22 = int_to_ptr.vmem [resolvable:$true] %s18_s22 }
   0x3   :  { %s618_s23 = scalar_lea.vmem %s19_s22, 2048  ;;  %p623_p1 = scmp.lt.s32.totalorder %s19_s22, %s19_s22 }
   0x4   :  { %p619_p0 = scmp.ne.s32.totalorder %s19_s22, %s618_s23  ;;  %p624_p2 = scmp.lt.s32.totalorder %s618_s23, %s618_s23 }
   0x6   :  { %p625_p3 = por %p624_p2, %p623_p1 }
   0x8   :  { %p626_p4 = pnand %p625_p3, %p619_p0 }
   0xa   :  { %629 = shalt.err (!%p626_p4)
}
   0xb   :  { %s655_s24 = smov 256   ;;  %s656_s25 = smov 16  }
   0xc   :  { %24 = dma.hbm_to_vmem [thread:$0]  %s859_s0, 2048, %s19_s22, [#allocation3], %s655_s24, %s655_s24, %s656_s25  }
   0xd   :  { %650 = dma.done.wait [#allocation3], 2048  }
   0xe   :  { %651 = vsyncadd [#allocation3], 4294965248  ;;  %v701_v0 = vld [vmem:[#allocation2 + $0x40] sm:$0xff]  ;;  %v703_v1 = vld [vmem:[#allocation2 + $0x48] sm:$0xff]  ;;  %v657_v30 = vmov 0.0   ;;  %vm658_vm0 = vmmov 0   ;;  %v126_v41 = vlaneseq }
   0xf   :  { %v705_v2 = vld [vmem:[#allocation2] sm:$0xff]  ;;  %v66_v3 = vadd.f32 %v703_v1, %v701_v0  ;;  %v709_v4 = vld [vmem:[#allocation2 + $0x8] sm:$0xff]  ;;  %v711_v5 = vld [vmem:[#allocation2 + $0x50] sm:$0xff]  ;;  %v98_v27 = vmax.f32 %v701_v0, %v703_v1  ;;  %584 = vmatprep.subr.mxu1 %v657_v30  ;;  %573 = vmatprep.subr.mxu0 %v657_v30  ;;  %vm137_vm1 = vcmask 130112   ;;  %vm144_vm2 = vcmask 195712  }
  0x10   :  { %v713_v6 = vld [vmem:[#allocation2 + $0x58] sm:$0xff]  ;;  %v54_v7 = vadd.f32 %v709_v4, %v705_v2  ;;  %v717_v8 = vld [vmem:[#allocation2 + $0x10] sm:$0xff]  ;;  %v725_v12 = vld [vmem:[#allocation2 + $0x60] sm:$0xff]  ;;  %v86_v25 = vmax.f32 %v705_v2, %v709_v4  ;;  %592 = vmatprep.mubr.msk.f32.mxu1 %vm658_vm0, %v657_v30  ;;  %581 = vmatprep.mubr.msk.f32.mxu0 %vm658_vm0, %v657_v30  ;;  %v127_v43 = vand.u32 127, %v126_v41  ;;  %v802_v48 = vshrl.u32 %v126_v41, 7 }
  0x11   :  { %v719_v9 = vld [vmem:[#allocation2 + $0x18] sm:$0xff]  ;;  %67 = vadd.xlane.f32.xlu1 %v66_v3  ;;  %v69_v10 = vadd.f32 %v713_v6, %v711_v5  ;;  %v727_v13 = vld [vmem:[#allocation2 + $0x68] sm:$0xff]  ;;  %v729_v14 = vld [vmem:[#allocation2 + $0x20] sm:$0xff]  ;;  %v101_v26 = vmax.f32 %v711_v5, %v713_v6  ;;  %vm151_vm3 = vcmask 261312   ;;  %vm172_vm4 = vcmask 1041409  }
  0x12   :  { %55 = vadd.xlane.f32.xlu0 %v54_v7  ;;  %v57_v11 = vadd.f32 %v719_v9, %v717_v8  ;;  %v731_v15 = vld [vmem:[#allocation2 + $0x28] sm:$0xff]  ;;  %v72_v16 = vadd.f32 %v727_v13, %v725_v12  ;;  %v737_v18 = vld [vmem:[#allocation2 + $0x70] sm:$0xff]  ;;  %v739_v19 = vld [vmem:[#allocation2 + $0x78] sm:$0xff]  ;;  %v89_v24 = vmax.f32 %v717_v8, %v719_v9  ;;  %v104_v28 = vmax.f32 %v725_v12, %v727_v13 }
  0x13   :  { %v60_v17 = vadd.f32 %v731_v15, %v729_v14  ;;  %v741_v20 = vld [vmem:[#allocation2 + $0x30] sm:$0xff]  ;;  %v743_v21 = vld [vmem:[#allocation2 + $0x38] sm:$0xff]  ;;  %v75_v22 = vadd.f32 %v739_v19, %v737_v18  ;;  %v92_v29 = vmax.f32 %v729_v14, %v731_v15  ;;  %v107_v33 = vmax.f32 %v737_v18, %v739_v19  ;;  %v111_v35 = vld [vmem:[%s860_s1 + $0x8] sm:$0xff] }
  0x14   :  { %v63_v23 = vadd.f32 %v743_v21, %v741_v20  ;;  %v113_v31 = vld [vmem:[%s860_s1 + $0x18] sm:$0xff]  ;;  %v112_v32 = vld [vmem:[%s860_s1 + $0x10] sm:$0xff]  ;;  %v95_v34 = vmax.f32 %v741_v20, %v743_v21  ;;  %v110_v36 = vld [vmem:[%s860_s1] sm:$0xff]  ;;  %v132_v45 = vadd.s32 4294967288, %v127_v43  ;;  %v139_v47 = vadd.s32 4294967280, %v127_v43 }
  0x15   :  { %70 = vadd.xlane.f32.xlu1 %v69_v10  ;;  %585 = vmatpush3.msra.mxu1 %v113_v31  ;;  %v117_v37 = vld [vmem:[%s861_s2 + $0x18] sm:$0xff]  ;;  %v116_v38 = vld [vmem:[%s861_s2 + $0x10] sm:$0xff]  ;;  %v115_v39 = vld [vmem:[%s861_s2 + $0x8] sm:$0xff]  ;;  %v146_v52 = vadd.s32 4294967272, %v127_v43  ;;  %v130_v56 = vsub.s32 %v127_v43, %v802_v48  ;;  %vm174_vm5 = vcmask 261120   ;;  %vm387_vm6 = vcmask 1041408  }
  0x16   :  { %58 = vadd.xlane.f32.xlu0 %v57_v11  ;;  %586 = vmatprep.subr.mxu1 %v657_v30  ;;  %v114_v40 = vld [vmem:[%s861_s2] sm:$0xff]  ;;  %v135_v50 = vsub.s32 %v132_v45, %v802_v48  ;;  %v142_v54 = vsub.s32 %v139_v47, %v802_v48  ;;  %vm383_vm7 = vcmask 15360  }
  0x17   :  { %587 = vmatpush3.msra.mxu1 %v112_v32  ;;  %574 = vmatpush3.msra.mxu0 %v117_v37  ;;  %v149_v63 = vsub.s32 %v146_v52, %v802_v48 }
  0x18   :  { %588 = vmatprep.subr.mxu1 %v657_v30  ;;  %575 = vmatprep.subr.mxu0 %v657_v30 }
  0x19   :  { %73 = vadd.xlane.f32.xlu1 %v72_v16  ;;  %589 = vmatpush3.msra.mxu1 %v111_v35 }
  0x1a   :  { %61 = vadd.xlane.f32.xlu0 %v60_v17  ;;  %590 = vmatprep.subr.mxu1 %v657_v30 }
  0x1b   :  { %591 = vmatpush3.msra.mxu1 %v110_v36  ;;  %576 = vmatpush3.msra.mxu0 %v116_v38 }
  0x1c   :  { %577 = vmatprep.subr.mxu0 %v657_v30 }
  0x1d   :  { %76 = vadd.xlane.f32.xlu1 %v75_v22  ;;  %578 = vmatpush3.msra.mxu0 %v115_v39 }
  0x1e   :  { %64 = vadd.xlane.f32.xlu0 %v63_v23  ;;  %579 = vmatprep.subr.mxu0 %v657_v30 }
  0x1f   :  { %580 = vmatpush3.msra.mxu0 %v114_v40 }
  0x20   :  { %595 = vmatprep.subr.mxu0 %v657_v30 }
  0x21   :  { %90 = vmax.xlane.f32.xlu1 %v89_v24 }
  0x22   :  { %87 = vmax.xlane.f32.xlu0 %v86_v25 }
  0x25   :  { %102 = vmax.xlane.f32.xlu1 %v101_v26 }
  0x26   :  { %99 = vmax.xlane.f32.xlu0 %v98_v27 }
  0x29   :  { %105 = vmax.xlane.f32.xlu1 %v104_v28 }
  0x2a   :  { %93 = vmax.xlane.f32.xlu0 %v92_v29 }
  0x2d   :  { %108 = vmax.xlane.f32.xlu1 %v107_v33 }
  0x2e   :  { %96 = vmax.xlane.f32.xlu0 %v95_v34 }
  0x9a   :  { %v68_v42 = vpop.xlane.xlu1 %67 }
  0x9b   :  { %v56_v44 = vpop.xlane.xlu0 %55  ;;  %v82_v57 = vmul.f32 0.00390625, %v68_v42 }
  0x9c   :  { %v78_v60 = vmul.f32 0.00390625, %v56_v44 }
  0x9d   :  { %v277_v11 = vrot.slane %v82_v57, %v130_v56 }
  0x9e   :  { %v71_v46 = vpop.xlane.xlu1 %70  ;;  %v258_v23 = vrot.slane %v78_v60, %v130_v56 }
  0x9f   :  { %v59_v49 = vpop.xlane.xlu0 %58  ;;  %v83_v51 = vmul.f32 0.00390625, %v71_v46 }
  0xa0   :  { %v79_v53 = vmul.f32 0.00390625, %v59_v49 }
  0xa1   :  { %v281_v62 = vrot.slane %v83_v51, %v135_v50 }
  0xa2   :  { %v74_v55 = vpop.xlane.xlu1 %73  ;;  %v262_v3 = vrot.slane %v79_v53, %v135_v50 }
  0xa3   :  { %v84_v58 = vmul.f32 0.00390625, %v74_v55  ;;  %v62_v59 = vpop.xlane.xlu0 %61  ;;  %v282_v25 = vsel %vm137_vm1, %v281_v62, %v277_v11 }
  0xa4   :  { %v80_v61 = vmul.f32 0.00390625, %v62_v59  ;;  %v263_v27 = vsel %vm137_vm1, %v262_v3, %v258_v23 }
  0xa5   :  { %v286_v7 = vrot.slane %v84_v58, %v142_v54 }
  0xa6   :  { %v77_v10 = vpop.xlane.xlu1 %76  ;;  %v267_v16 = vrot.slane %v80_v61, %v142_v54 }
  0xa7   :  { %v85_v17 = vmul.f32 0.00390625, %v77_v10  ;;  %v65_v22 = vpop.xlane.xlu0 %64  ;;  %v287_v28 = vsel %vm144_vm2, %v286_v7, %v282_v25 }
  0xa8   :  { %v81_v24 = vmul.f32 0.00390625, %v65_v22  ;;  %v268_v32 = vsel %vm144_vm2, %v267_v16, %v263_v27 }
  0xa9   :  { %v291_v26 = vrot.slane %v85_v17, %v149_v63 }
  0xaa   :  { %v272_v29 = vrot.slane %v81_v24, %v149_v63  ;;  %v91_v31 = vpop.xlane.xlu1 %90 }
  0xab   :  { %v88_v33 = vpop.xlane.xlu0 %87  ;;  %v292_v34 = vsel %vm151_vm3, %v291_v26, %v287_v28  ;;  %v136_v43 = vrot.slane %v91_v31, %v135_v50  ;;  %v469_v26 = vsub.s32 0, %v802_v48 }
  0xac   :  { %v273_v35 = vsel %vm151_vm3, %v272_v29, %v268_v32  ;;  %v131_v44 = vrot.slane %v88_v33, %v130_v56  ;;  %v488_v29 = vsub.s32 1, %v802_v48 }
  0xad   :  { %v293_v36 = vsel %vm172_vm4, %v292_v34, %v273_v35 }
  0xae   :  { %593 = vmatmul.mubr.msk.f32.vlgmr.msra.gmra.mxu1 %vm174_vm5, %v293_v36  ;;  %v103_v37 = vpop.xlane.xlu1 %102  ;;  %v138_v53 = vsel %vm137_vm1, %v136_v43, %v131_v44 }
  0xaf   :  { %v100_v38 = vpop.xlane.xlu0 %99  ;;  %v160_v40 = vrot.slane %v103_v37, %v135_v50 }
  0xb0   :  { %v156_v41 = vrot.slane %v100_v38, %v130_v56 }
  0xb2   :  { %v106_v39 = vpop.xlane.xlu1 %105  ;;  %v161_v49 = vsel %vm137_vm1, %v160_v40, %v156_v41 }
  0xb3   :  { %v94_v42 = vpop.xlane.xlu0 %93  ;;  %v165_v45 = vrot.slane %v106_v39, %v142_v54 }
  0xb4   :  { %v143_v46 = vrot.slane %v94_v42, %v142_v54  ;;  %v375_v54 = vld [vmem:[%s863_s4] sm:$0x3] }
  0xb5   :  { %v166_v55 = vsel %vm144_vm2, %v165_v45, %v161_v49 }
  0xb6   :  { %v109_v47 = vpop.xlane.xlu1 %108  ;;  %v145_v58 = vsel %vm144_vm2, %v143_v46, %v138_v53 }
  0xb7   :  { %v170_v51 = vrot.slane %v109_v47, %v149_v63  ;;  %v97_v52 = vpop.xlane.xlu0 %96 }
  0xb8   :  { %v150_v57 = vrot.slane %v97_v52, %v149_v63  ;;  %v556_v63 = vld [vmem:[%s862_s3] ss:$0 sm:$0xff]  ;;  %s659_s3 = smov [#allocation5]  }
  0xb9   :  { %v171_v59 = vsel %vm151_vm3, %v170_v51, %v166_v55  ;;  %s542_s4 = sshll.u32 %s659_s3, 4  ;;  %s543_s4 = int_to_ptr.vmem [resolvable:$true] %s542_s4 }
  0xba   :  { %v152_v60 = vsel %vm151_vm3, %v150_v57, %v145_v58  ;;  %p635_p6 = scmp.lt.s32.totalorder %s543_s4, %s543_s4 }
  0xbb   :  { %v173_v50 = vsel %vm172_vm4, %v171_v59, %v152_v60 }
  0xbc   :  { %582 = vmatmul.mubr.msk.f32.vlgmr.msra.gmra.mxu0 %vm174_vm5, %v173_v50 }
  0xbd   :  { %597 = vmatprep.mubr.msk.f32.mxu0 %vm658_vm0, %v657_v30  ;;  %596 = vmatpush3.msk.msra.mxu0 %vm387_vm6, %v375_v54  ;;  %v557_v30 = vld [vmem:[%s864_s5] ss:$0 sm:$0xff]  ;;  %s630_s5 = scalar_lea.vmem %s543_s4, 2048 }
  0xbe   :  { %p631_p5 = scmp.ne.s32.totalorder %s543_s4, %s630_s5  ;;  %p636_p7 = scmp.lt.s32.totalorder %s630_s5, %s630_s5 }
  0xc0   :  { %p637_p8 = por %p636_p7, %p635_p6 }
  0xc2   :  { %p638_p9 = pnand %p637_p8, %p631_p5 }
 0x16e   :  { %v362_v56 = vpop.f32.mrf.mxu1 }
 0x170   :  { %v594_v61 = vpop.f32.mrf.mxu1 }
 0x17c   :  { %v243_v62 = vpop.f32.mrf.mxu0 }
 0x17d   :  { %v363_v3 = vadd.f32 %v362_v56, %v243_v62 }
 0x17e   :  { %v583_v7 = vpop.f32.mrf.mxu0 }
 0x17f   :  { %v373_v10 = vadd.f32 %v556_v63, %v363_v3 }
 0x181   :  { %v374_v11 = vmax.f32 %v373_v10, 0.0 }
 0x183   :  { %598 = vmatmul.mubr.msk.f32.vlgmr.msra.gmra.mxu0 %vm383_vm7, %v374_v11 }
 0x243   :  { %v457_v16 = vpop.f32.mrf.mxu0 }
 0x244   :  { %v458_v17 = vadd.f32 %v557_v30, %v457_v16 }
 0x245   :  { %v599_v22 = vpop.f32.mrf.mxu0 }
 0x246   :  { %v560_v23 = vmul.f32 -1.442695, %v458_v17 }
 0x248   :  { %606 = vpow2.f32 %v560_v23 }
 0x255   :  { %v607_v24 = vpop.eup %606 }
 0x256   :  { %v464_v25 = vadd.f32 1.0, %v607_v24 }
 0x258   :  { %608 = vrcp.f32 %v464_v25 }
 0x265   :  { %v609_v27 = vpop.eup %608 }
 0x266   :  { %v470_v28 = vrot.slane %v609_v27, %v469_v26  ;;  %v489_v31 = vrot.slane %v609_v27, %v488_v29 }
 0x268   :  { %476 = vbcast.lane.b32.xlu1 %v470_v28, 264  ;;  %472 = vbcast.lane.b32.xlu0 %v470_v28, 256 }
 0x26c   :  { %480 = vbcast.lane.b32.xlu1 %v470_v28, 272  ;;  %491 = vbcast.lane.b32.xlu0 %v489_v31, 256 }
 0x270   :  { %484 = vbcast.lane.b32.xlu1 %v470_v28, 280  ;;  %499 = vbcast.lane.b32.xlu0 %v489_v31, 272 }
 0x274   :  { %495 = vbcast.lane.b32.xlu1 %v489_v31, 264 }
 0x278   :  { %503 = vbcast.lane.b32.xlu1 %v489_v31, 280 }
 0x2da   :  { %v477_v32 = vpop.permute.xlu1 %476  ;;  %v473_v33 = vpop.permute.xlu0 %472 }
 0x2db   :  { %v507_v34 = vmul.f32 %v477_v32, %v717_v8  ;;  %v508_v35 = vmul.f32 %v477_v32, %v719_v9  ;;  %v505_v36 = vmul.f32 %v473_v33, %v705_v2  ;;  %v506_v37 = vmul.f32 %v473_v33, %v709_v4 }
 0x2dd   :  { %523 = vst [vmem:[#allocation5 + $0x10] sm:$0xff] %v507_v34  ;;  %524 = vst [vmem:[#allocation5 + $0x18] sm:$0xff] %v508_v35 }
 0x2de   :  { %521 = vst [vmem:[#allocation5] sm:$0xff] %v505_v36  ;;  %522 = vst [vmem:[#allocation5 + $0x8] sm:$0xff] %v506_v37  ;;  %v481_v48 = vpop.permute.xlu1 %480  ;;  %v492_v38 = vpop.permute.xlu0 %491 }
 0x2df   :  { %v509_v39 = vmul.f32 %v481_v48, %v729_v14  ;;  %v510_v40 = vmul.f32 %v481_v48, %v731_v15  ;;  %v513_v41 = vmul.f32 %v492_v38, %v701_v0  ;;  %v514_v8 = vmul.f32 %v492_v38, %v703_v1 }
 0x2e1   :  { %525 = vst [vmem:[#allocation5 + $0x20] sm:$0xff] %v509_v39  ;;  %526 = vst [vmem:[#allocation5 + $0x28] sm:$0xff] %v510_v40 }
 0x2e2   :  { %529 = vst [vmem:[#allocation5 + $0x40] sm:$0xff] %v513_v41  ;;  %530 = vst [vmem:[#allocation5 + $0x48] sm:$0xff] %v514_v8  ;;  %v485_v2 = vpop.permute.xlu1 %484  ;;  %v500_v4 = vpop.permute.xlu0 %499 }
 0x2e3   :  { %v511_v9 = vmul.f32 %v485_v2, %v741_v20  ;;  %v512_v42 = vmul.f32 %v485_v2, %v743_v21  ;;  %v517_v43 = vmul.f32 %v500_v4, %v725_v12  ;;  %v518_v14 = vmul.f32 %v500_v4, %v727_v13 }
 0x2e5   :  { %527 = vst [vmem:[#allocation5 + $0x30] sm:$0xff] %v511_v9  ;;  %528 = vst [vmem:[#allocation5 + $0x38] sm:$0xff] %v512_v42 }
 0x2e6   :  { %533 = vst [vmem:[#allocation5 + $0x60] sm:$0xff] %v517_v43  ;;  %534 = vst [vmem:[#allocation5 + $0x68] sm:$0xff] %v518_v14  ;;  %v496_v0 = vpop.permute.xlu1 %495 }
 0x2e7   :  { %v515_v1 = vmul.f32 %v496_v0, %v711_v5  ;;  %v516_v15 = vmul.f32 %v496_v0, %v713_v6 }
 0x2e9   :  { %531 = vst [vmem:[#allocation5 + $0x50] sm:$0xff] %v515_v1  ;;  %532 = vst [vmem:[#allocation5 + $0x58] sm:$0xff] %v516_v15 }
 0x2ea   :  { %v504_v20 = vpop.permute.xlu1 %503 }
 0x2eb   :  { %v519_v21 = vmul.f32 %v504_v20, %v737_v18  ;;  %v520_v12 = vmul.f32 %v504_v20, %v739_v19 }
 0x2ed   :  { %535 = vst [vmem:[#allocation5 + $0x70] sm:$0xff] %v519_v21  ;;  %536 = vst [vmem:[#allocation5 + $0x78] sm:$0xff] %v520_v12 }
 0x2ee   :  { %641 = shalt.err (!%p638_p9)
}
 0x2ef   :  { %548 = dma.vmem_to_hbm [thread:$0]  %s543_s4, 2048, %s865_s6, [#allocation4], %s655_s24, %s655_s24, %s656_s25  }
 0x2f0   :  { %652 = dma.done.wait [#allocation4], 2048  }
 0x2f1   :  { %653 = vsyncadd [#allocation4], 4294965248 }
 0x2f2   :  { %552 = vsyncpa [#allocation3], 1 }
 0x2f3   :  { %553 = vsyncpa [#allocation4], 1 }

</bundles_post_ra>
